<compile_context>
chip_gen: v7x
topology: tpu7x:2x2x1
jax: 0.10.0
libtpu: 0.0.40
codegen_flags: <defaults>
</compile_context>

<pallas_src>
import functools

import jax
import jax.numpy as jnp
from jax.experimental import pallas as pl
from jax.experimental.pallas import tpu as pltpu


def _weighted_nll_kernel(x_ref, t_ref, w_ref, sum_ref, wsum_ref, acc_x, acc_n,
                         *, seq_len, tile_len):
    """One grid step processes a (1, C, TL) slab of one image.

    x_ref:    (1, C, TL)  log-probabilities (any float dtype; upcast in-kernel)
    t_ref:    (1, 1, TL)  int32 class indices
    w_ref:    (C, 1)      float32 per-class weights
    sum_ref:  (1, 1, 1)   per-image  sum_i w[t_i] * x[i, t_i]
    wsum_ref: (1, 1, 1)   per-image  sum_i w[t_i]
    acc_x:    (C, TL)     per-class, per-lane partial sums of selected log-probs
    acc_n:    (C, TL)     per-class, per-lane selected-pixel counts
    """
    l = pl.program_id(1)

    @pl.when(l == 0)
    def _():
        acc_x[...] = jnp.zeros_like(acc_x)
        acc_n[...] = jnp.zeros_like(acc_n)

    x = x_ref[0].astype(jnp.float32)       # (C, TL)  upcast on load (bf16-friendly)
    tgt = t_ref[0]                         # (1, TL)

    C, TL = x.shape
    cls = jax.lax.broadcasted_iota(jnp.int32, (C, TL), 0)   # class id per sublane
    hit = cls == tgt                                        # (C, TL) one-hot mask

    # Mask the ragged tail of the last spatial tile (no jnp.pad of inputs needed).
    if seq_len % tile_len != 0:
        lane = jax.lax.broadcasted_iota(jnp.int32, (1, TL), 1) + l * tile_len
        hit = jnp.logical_and(hit, lane < seq_len)

    # Two masked adds per step; no per-step cross-lane/sublane reductions, no
    # per-step weight multiply.
    acc_x[...] += jnp.where(hit, x, 0.0)
    acc_n[...] += jnp.where(hit, 1.0, 0.0)

    # Finalize once per image, on the last spatial tile: lane-reduce, weight, store.
    @pl.when(l == pl.num_programs(1) - 1)
    def _():
        w = w_ref[...]                                              # (C, 1) f32
        per_class_x = jnp.sum(acc_x[...], axis=1, keepdims=True)    # (C, 1)
        per_class_n = jnp.sum(acc_n[...], axis=1, keepdims=True)    # (C, 1)
        sum_ref[0] = jnp.sum(w * per_class_x, keepdims=True)        # (1, 1)
        wsum_ref[0] = jnp.sum(w * per_class_n, keepdims=True)       # (1, 1)


def _choose_tile_len(C, L):
    """Largest lane tile (multiple of 128) s.t. a log-prob block is ~2 MiB."""
    target_bytes = 2 * 1024 * 1024
    tl = (target_bytes // (max(C, 1) * 4)) // 128 * 128
    tl = max(128, min(tl, 131072))
    if L <= tl:
        return L          # full last dim is always a legal block extent
    return tl             # multiple of 128


@functools.partial(jax.jit, static_argnames=("size_average",))
def weighted_loss(inp_nchw, target_nhw, weight, size_average=True):
    """Weighted NLL loss over NCHW log-probabilities (PyTorch _WeightedLoss backend)."""
    N, C, H, W = inp_nchw.shape
    L = H * W

    # Shape-only reshapes: no transpose, no pad, no wrapper-side dtype cast of x.
    x = inp_nchw.reshape(N, C, L)
    t = target_nhw.reshape(N, 1, L).astype(jnp.int32)
    w = weight.astype(jnp.float32).reshape(C, 1)

    TL = _choose_tile_len(C, L)
    nl = pl.cdiv(L, TL)

    kernel = functools.partial(_weighted_nll_kernel, seq_len=L, tile_len=TL)

    out_sum, out_wsum = pl.pallas_call(
        kernel,
        out_shape=(
            jax.ShapeDtypeStruct((N, 1, 1), jnp.float32),
            jax.ShapeDtypeStruct((N, 1, 1), jnp.float32),
        ),
        grid_spec=pltpu.PrefetchScalarGridSpec(
            num_scalar_prefetch=0,
            grid=(N, nl),
            in_specs=[
                pl.BlockSpec((1, C, TL), lambda n, l: (n, 0, l)),
                pl.BlockSpec((1, 1, TL), lambda n, l: (n, 0, l)),
                pl.BlockSpec((C, 1), lambda n, l: (0, 0)),
            ],
            out_specs=(
                pl.BlockSpec((1, 1, 1), lambda n, l: (n, 0, 0)),
                pl.BlockSpec((1, 1, 1), lambda n, l: (n, 0, 0)),
            ),
            scratch_shapes=[
                pltpu.VMEM((C, TL), jnp.float32),
                pltpu.VMEM((C, TL), jnp.float32),
            ],
        ),
        compiler_params=pltpu.CompilerParams(
            dimension_semantics=("parallel", "arbitrary")),
    )(x, t, w)

    total = jnp.sum(out_sum)
    wtotal = jnp.sum(out_wsum)
    if size_average:
        return -total / wtotal
    return -total


def _reference(inp_nchw, target_nhw, weight, size_average=True):
    N, C, H, W = inp_nchw.shape
    x = jnp.transpose(inp_nchw, (0, 2, 3, 1)).reshape(-1, C)
    t = target_nhw.reshape(-1)
    picked = x[jnp.arange(x.shape[0]), t]
    wsel = weight[t]
    s = jnp.sum(wsel * picked)
    if size_average:
        return -s / jnp.sum(wsel)
    return -s


if __name__ == "__main__":
    key = jax.random.PRNGKey(0)
    k1, k2 = jax.random.split(key)

    N, C, H, W = 2, 4, 16, 16
    logits = jax.random.normal(k1, (N, C, H, W), dtype=jnp.float32)
    log_probs = jax.nn.log_softmax(logits, axis=1)   # what NLL expects
    target = jax.random.randint(k2, (N, H, W), 0, C, dtype=jnp.int32)

    # deterministic per-class weight buffer (shape (C,), as registered in __init__)
    weight = 0.5 + 0.1 * jnp.arange(C, dtype=jnp.float32)

    loss = weighted_loss(log_probs, target, weight, size_average=True)
    jax.block_until_ready(loss)
    ref = _reference(log_probs, target, weight, size_average=True)
    assert jnp.allclose(loss, ref, rtol=1e-5, atol=1e-5), (loss, ref)

    loss_sum = weighted_loss(log_probs, target, weight, size_average=False)
    jax.block_until_ready(loss_sum)
    ref_sum = _reference(log_probs, target, weight, size_average=False)
    assert jnp.allclose(loss_sum, ref_sum, rtol=1e-5, atol=1e-5), (loss_sum, ref_sum)

    print("KERNEL_OK")
</pallas_src>

<mosaic_0001>
module attributes {stable_mosaic.version = 11 : i64} {
  func.func @_weighted_nll_kernel(%arg0: i32, %arg1: i32, %arg2: memref<1x4x256xf32, #tpu.memory_space<vmem>>, %arg3: memref<1x1x256xi32, #tpu.memory_space<vmem>>, %arg4: memref<4x1xf32, #tpu.memory_space<vmem>>, %arg5: memref<1x1x1xf32, #tpu.memory_space<vmem>>, %arg6: memref<1x1x1xf32, #tpu.memory_space<vmem>>, %arg7: memref<4x256xf32, #tpu.memory_space<vmem>>, %arg8: memref<4x256xf32, #tpu.memory_space<vmem>>) attributes {dimension_semantics = [#tpu.dimension_semantics<parallel>, #tpu.dimension_semantics<arbitrary>], iteration_bounds = array<i64: 2, 1>, scalar_prefetch = 0 : i64, scratch_operands = 2 : i64, tpu.core_type = #tpu.core_type<tc>, window_params = [{transform_indices = @transform_0, window_bounds = array<i64: 1, 4, 256>}, {transform_indices = @transform_1, window_bounds = array<i64: 1, 1, 256>}, {pipeline_mode = #tpu.pipeline_mode<synchronous>, transform_indices = @transform_2, window_bounds = array<i64: 4, 1>}, {transform_indices = @transform_3, window_bounds = array<i64: 1, 1, 1>}, {transform_indices = @transform_4, window_bounds = array<i64: 1, 1, 1>}]} {
    %c0_i32 = arith.constant 0 : i32
    %0 = arith.cmpi eq, %arg1, %c0_i32 : i32
    %1 = arith.extui %0 : i1 to i32
    %c0_i32_0 = arith.constant 0 : i32
    %2 = arith.cmpi ne, %1, %c0_i32_0 : i32
    scf.if %2 {
      %cst_18 = arith.constant 0.000000e+00 : f32
      %24 = vector.broadcast %cst_18 : f32 to vector<4x256xf32>
      %c0_19 = arith.constant 0 : index
      %c0_20 = arith.constant 0 : index
      %25 = vector.load %arg7[%c0_19, %c0_20] : memref<4x256xf32, #tpu.memory_space<vmem>>, vector<4x256xf32>
      tpu.vector_store %arg7[%c0_19, %c0_20], %24 {strides = array<i32>} : memref<4x256xf32, #tpu.memory_space<vmem>>, vector<4x256xf32>,
      %cst_21 = arith.constant 0.000000e+00 : f32
      %26 = vector.broadcast %cst_21 : f32 to vector<4x256xf32>
      %c0_22 = arith.constant 0 : index
      %c0_23 = arith.constant 0 : index
      %27 = vector.load %arg8[%c0_22, %c0_23] : memref<4x256xf32, #tpu.memory_space<vmem>>, vector<4x256xf32>
      tpu.vector_store %arg8[%c0_22, %c0_23], %26 {strides = array<i32>} : memref<4x256xf32, #tpu.memory_space<vmem>>, vector<4x256xf32>,
    } else {
    }
    %c0 = arith.constant 0 : index
    %c0_1 = arith.constant 0 : index
    %c0_2 = arith.constant 0 : index
    %3 = vector.load %arg2[%c0, %c0_1, %c0_2] : memref<1x4x256xf32, #tpu.memory_space<vmem>>, vector<1x4x256xf32>
    %4 = vector.shape_cast %3 : vector<1x4x256xf32> to vector<4x256xf32>
    %c0_3 = arith.constant 0 : index
    %c0_4 = arith.constant 0 : index
    %c0_5 = arith.constant 0 : index
    %5 = vector.load %arg3[%c0_3, %c0_4, %c0_5] : memref<1x1x256xi32, #tpu.memory_space<vmem>>, vector<1x1x256xi32>
    %6 = vector.shape_cast %5 : vector<1x1x256xi32> to vector<1x256xi32>
    %7 = tpu.iota {dimensions = array<i32: 0>} : vector<4x256xi32>
    %8 = vector.broadcast %6 : vector<1x256xi32> to vector<4x256xi32>
    %9 = arith.cmpi eq, %7, %8 : vector<4x256xi32>
    %c0_6 = arith.constant 0 : index
    %c0_7 = arith.constant 0 : index
    %10 = vector.load %arg7[%c0_6, %c0_7] : memref<4x256xf32, #tpu.memory_space<vmem>>, vector<4x256xf32>
    %cst = arith.constant 0.000000e+00 : f32
    %11 = vector.broadcast %cst : f32 to vector<4x256xf32>
    %12 = arith.select %9, %4, %11 : vector<4x256xi1>, vector<4x256xf32>
    %13 = arith.addf %10, %12 : vector<4x256xf32>
    %c0_8 = arith.constant 0 : index
    %c0_9 = arith.constant 0 : index
    %14 = vector.load %arg7[%c0_8, %c0_9] : memref<4x256xf32, #tpu.memory_space<vmem>>, vector<4x256xf32>
    tpu.vector_store %arg7[%c0_8, %c0_9], %13 {strides = array<i32>} : memref<4x256xf32, #tpu.memory_space<vmem>>, vector<4x256xf32>,
    %c0_10 = arith.constant 0 : index
    %c0_11 = arith.constant 0 : index
    %15 = vector.load %arg8[%c0_10, %c0_11] : memref<4x256xf32, #tpu.memory_space<vmem>>, vector<4x256xf32>
    %cst_12 = arith.constant 1.000000e+00 : f32
    %cst_13 = arith.constant 0.000000e+00 : f32
    %16 = vector.broadcast %cst_12 : f32 to vector<4x256xf32>
    %17 = vector.broadcast %cst_13 : f32 to vector<4x256xf32>
    %18 = arith.select %9, %16, %17 : vector<4x256xi1>, vector<4x256xf32>
    %19 = arith.addf %15, %18 : vector<4x256xf32>
    %c0_14 = arith.constant 0 : index
    %c0_15 = arith.constant 0 : index
    %20 = vector.load %arg8[%c0_14, %c0_15] : memref<4x256xf32, #tpu.memory_space<vmem>>, vector<4x256xf32>
    tpu.vector_store %arg8[%c0_14, %c0_15], %19 {strides = array<i32>} : memref<4x256xf32, #tpu.memory_space<vmem>>, vector<4x256xf32>,
    %c0_i32_16 = arith.constant 0 : i32
    %21 = arith.cmpi eq, %arg1, %c0_i32_16 : i32
    %22 = arith.extui %21 : i1 to i32
    %c0_i32_17 = arith.constant 0 : i32
    %23 = arith.cmpi ne, %22, %c0_i32_17 : i32
    scf.if %23 {
      %c0_18 = arith.constant 0 : index
      %c0_19 = arith.constant 0 : index
      %24 = vector.load %arg4[%c0_18, %c0_19] : memref<4x1xf32, #tpu.memory_space<vmem>>, vector<4x1xf32>
      %c0_20 = arith.constant 0 : index
      %c0_21 = arith.constant 0 : index
      %25 = vector.load %arg7[%c0_20, %c0_21] : memref<4x256xf32, #tpu.memory_space<vmem>>, vector<4x256xf32>
      %cst_22 = arith.constant dense<0.000000e+00> : vector<4xf32>
      %26 = vector.multi_reduction <add>, %25, %cst_22 [1] : vector<4x256xf32> to vector<4xf32>
      %27 = vector.shape_cast %26 : vector<4xf32> to vector<4x1xf32>
      %c0_23 = arith.constant 0 : index
      %c0_24 = arith.constant 0 : index
      %28 = vector.load %arg8[%c0_23, %c0_24] : memref<4x256xf32, #tpu.memory_space<vmem>>, vector<4x256xf32>
      %cst_25 = arith.constant dense<0.000000e+00> : vector<4xf32>
      %29 = vector.multi_reduction <add>, %28, %cst_25 [1] : vector<4x256xf32> to vector<4xf32>
      %30 = vector.shape_cast %29 : vector<4xf32> to vector<4x1xf32>
      %31 = arith.mulf %24, %27 : vector<4x1xf32>
      %32 = vector.shape_cast %31 : vector<4x1xf32> to vector<1x4x1xf32>
      %cst_26 = arith.constant dense<0.000000e+00> : vector<1xf32>
      %33 = vector.multi_reduction <add>, %32, %cst_26 [1, 2] : vector<1x4x1xf32> to vector<1xf32>
      %34 = vector.shape_cast %33 : vector<1xf32> to vector<1x1x1xf32>
      %35 = vector.extract %34[0, 0, 0] : f32 from vector<1x1x1xf32>
      %36 = vector.broadcast %35 : f32 to vector<1x1xf32>
      %c0_27 = arith.constant 0 : index
      %c0_28 = arith.constant 0 : index
      %c0_29 = arith.constant 0 : index
      %37 = vector.load %arg5[%c0_27, %c0_28, %c0_29] : memref<1x1x1xf32, #tpu.memory_space<vmem>>, vector<1x1x1xf32>
      %38 = vector.shape_cast %37 : vector<1x1x1xf32> to vector<1x1xf32>
      %39 = vector.shape_cast %36 : vector<1x1xf32> to vector<1x1x1xf32>
      tpu.vector_store %arg5[%c0_27, %c0_28, %c0_29], %39 {strides = array<i32>} : memref<1x1x1xf32, #tpu.memory_space<vmem>>, vector<1x1x1xf32>,
      %40 = arith.mulf %24, %30 : vector<4x1xf32>
      %41 = vector.shape_cast %40 : vector<4x1xf32> to vector<1x4x1xf32>
      %cst_30 = arith.constant dense<0.000000e+00> : vector<1xf32>
      %42 = vector.multi_reduction <add>, %41, %cst_30 [1, 2] : vector<1x4x1xf32> to vector<1xf32>
      %43 = vector.shape_cast %42 : vector<1xf32> to vector<1x1x1xf32>
      %44 = vector.extract %43[0, 0, 0] : f32 from vector<1x1x1xf32>
      %45 = vector.broadcast %44 : f32 to vector<1x1xf32>
      %c0_31 = arith.constant 0 : index
      %c0_32 = arith.constant 0 : index
      %c0_33 = arith.constant 0 : index
      %46 = vector.load %arg6[%c0_31, %c0_32, %c0_33] : memref<1x1x1xf32, #tpu.memory_space<vmem>>, vector<1x1x1xf32>
      %47 = vector.shape_cast %46 : vector<1x1x1xf32> to vector<1x1xf32>
      %48 = vector.shape_cast %45 : vector<1x1xf32> to vector<1x1x1xf32>
      tpu.vector_store %arg6[%c0_31, %c0_32, %c0_33], %48 {strides = array<i32>} : memref<1x1x1xf32, #tpu.memory_space<vmem>>, vector<1x1x1xf32>,
    } else {
    }
    return
  }
  func.func @transform_0(%arg0: i32, %arg1: i32) -> (i32, i32, i32) {
    %c0_i32 = arith.constant 0 : i32
    %c0_i32_0 = arith.constant 0 : i32
    return %arg0, %c0_i32, %arg1 : i32, i32, i32
  }
  func.func @transform_1(%arg0: i32, %arg1: i32) -> (i32, i32, i32) {
    %c0_i32 = arith.constant 0 : i32
    %c0_i32_0 = arith.constant 0 : i32
    return %arg0, %c0_i32, %arg1 : i32, i32, i32
  }
  func.func @transform_2(%arg0: i32, %arg1: i32) -> (i32, i32) {
    %c0_i32 = arith.constant 0 : i32
    %c0_i32_0 = arith.constant 0 : i32
    %c0_i32_1 = arith.constant 0 : i32
    return %c0_i32, %c0_i32_0 : i32, i32
  }
  func.func @transform_3(%arg0: i32, %arg1: i32) -> (i32, i32, i32) {
    %c0_i32 = arith.constant 0 : i32
    %c0_i32_0 = arith.constant 0 : i32
    %c0_i32_1 = arith.constant 0 : i32
    return %arg0, %c0_i32, %c0_i32_0 : i32, i32, i32
  }
  func.func @transform_4(%arg0: i32, %arg1: i32) -> (i32, i32, i32) {
    %c0_i32 = arith.constant 0 : i32
    %c0_i32_0 = arith.constant 0 : i32
    %c0_i32_1 = arith.constant 0 : i32
    return %arg0, %c0_i32, %c0_i32_0 : i32, i32, i32
  }
}

</mosaic_0001>

<bundles_post_ra>
// kernel: weighted_loss.1
= control target key start
LH: loop header
LB: loop body
LE: loop exit
PB: predicated region body
PF: predicated region fallthrough
CT: control target
= control target key end

     0   :  { %s550_s15 = smov 0   ;;  %s552_s16 = smov 0   ;;  %s598_s0 = inlined_call_operand.vmem [shape: f32[2,4,256], index: 0, kind: input, shape index: {}]   ;;  %s599_s1 = inlined_call_operand.vmem [shape: s32[2,1,256], index: 1, kind: input, shape index: {}]   ;;  %s600_s2 = inlined_call_operand.vmem [shape: f32[4,1], index: 2, kind: input, shape index: {}]   ;;  %s601_s3 = inlined_call_operand.vmem [shape: f32[2,1,1], index: 3, kind: output, shape index: {0}]   ;;  %s602_s4 = inlined_call_operand.vmem [shape: f32[2,1,1], index: 4, kind: output, shape index: {1}]  }
   0x1   :  { %s554_s17 = smov 0  }
   0x2 LB: > { %s27_s18 = sadd.s32 1, %s518_s16  ;;  %p461_p0 = scmp.ge.s32.totalorder %s522_s17, 1  ;;  %s522_s17 = sphi %s554_s17, %s15_s17   ;;  %s518_s16 = sphi %s552_s16, %s604_s16   ;;  %s514_s15 = sphi %s550_s15, %s603_s15  }
   0x3   : > { %p29_p1 = scmp.ge.s32.totalorder %s27_s18, 2  ;;  %p200_p2 = scmp.lt.s32.totalorder %s522_s17, 3 }
   0x5   : > { %s606_s18 = smov (%p29_p1, %s27_s18), 0  ;;  %p201_p3 = pnand %p461_p0, %p200_p2 }
   0x6   : > { %p240_p4 = scmp.lt.s32.totalorder (!%p201_p3), %s514_s15, 1  ;;  %v272_v0 = vlaneseq (!%p201_p3)  ;;  %vm313_vm2 = vcmask (!%p201_p3), 1043456   ;;  %v524_v11 = vmov (!%p201_p3), 0.0   ;;  %v308_v24 = vld [vmem:[%s600_s2] sm:$0xf] (!%p201_p3)  ;;  %vm329_vm3 = vcmask (!%p201_p3), 3072  }
   0x7   : > { %204 = sbr.rel (%p201_p3) target bundleno = 383 (0x17f), region = 32  ;;  %vm341_vm4 = vcmask (!%p201_p3), 0  }
   0x8   : > { %v273_v1 = vshrl.u32 (!%p201_p3), %v272_v0, 7 }
   0xa   : > { %v276_v2 = vsub.s32 (!%p201_p3), 0, %v273_v1  ;;  %v280_v3 = vsub.s32 (!%p201_p3), 1, %v273_v1 }
   0xe   : > { %s608_s15 = smov (!%p240_p4, %s514_s15), 1 }
   0xf   : > { %s467_s19 = sshll.u32 %s608_s15, 3  ;;  %s464_s20 = sshll.u32 %s608_s15, 1 }
  0x10   : > { %s247_s23 = scalar_lea.vmem %s598_s0, %s467_s19  ;;  %s256_s26 = scalar_lea.vmem %s599_s1, %s464_s20 }
  0x11   : > { %v270_v4 = vld [vmem:[%s247_s23] sm:$0xff]  ;;  %s260_s5 = scalar_lea.vmem %s601_s3, %s608_s15  ;;  %s263_s9 = scalar_lea.vmem %s602_s4, %s608_s15 }
  0x12   : > { %v271_v5 = vld [vmem:[%s256_s26] sm:$0x3]  ;;  %v286_v8 = vcombine.high %v270_v4, %v270_v4 }
  0x13   : > { %v277_v6 = vrot.slane %v271_v5, %v276_v2  ;;  %v281_v7 = vrot.slane %v271_v5, %v280_v3 }
  0x15   : > { %vm282_vm0 = vcmp.eq.s32.totalorder %v273_v1, %v277_v6  ;;  %vm283_vm1 = vcmp.eq.s32.totalorder %v273_v1, %v281_v7 }
  0x16   : > { %v288_v9 = vsel %vm282_vm0, %v270_v4, 0.0  ;;  %v289_v10 = vsel %vm283_vm1, %v286_v8, 0.0  ;;  %v297_v12 = vsel %vm282_vm0, 1.0, %v524_v11  ;;  %v298_v13 = vsel %vm283_vm1, 1.0, %v524_v11 }
  0x17   : > { %v292_v14 = vcombine.low %v288_v9, %v289_v10  ;;  %v468_v15 = vcombine.low %v289_v10, %v289_v10  ;;  %v301_v16 = vcombine.low %v297_v12, %v298_v13  ;;  %v469_v17 = vcombine.low %v298_v13, %v298_v13 }
  0x19   : > { %v314_v18 = vsel %vm313_vm2, %v292_v14, 0.0  ;;  %v315_v19 = vsel %vm313_vm2, %v468_v15, 0.0  ;;  %v323_v20 = vsel %vm313_vm2, %v301_v16, 0.0  ;;  %v324_v21 = vsel %vm313_vm2, %v469_v17, 0.0 }
  0x1a   : > { %v316_v22 = vadd.f32 %v315_v19, %v314_v18  ;;  %v325_v23 = vadd.f32 %v324_v21, %v323_v20 }
  0x1c   : > { %317 = vadd.xlane.f32.xlu0 %v316_v22 }
  0x20   : > { %326 = vadd.xlane.f32.xlu0 %v325_v23 }
  0xa9   : > { %v318_v25 = vpop.xlane.xlu0 %317 }
  0xaa   : > { %v328_v26 = vmul.f32 %v318_v25, %v308_v24 }
  0xac   : > { %v330_v27 = vsel %vm329_vm3, %v328_v26, 0.0 }
  0xad   : > { %331 = vadd.xlane.f32.xlu1 %v330_v27  ;;  %v327_v28 = vpop.xlane.xlu0 %326 }
  0xae   : > { %v343_v29 = vmul.f32 %v327_v28, %v308_v24 }
  0xb0   : > { %v344_v30 = vsel %vm329_vm3, %v343_v29, 0.0 }
  0xb1   : > { %345 = vadd.xlane.f32.xlu1 %v344_v30 }
 0x13a   : > { %v332_v31 = vpop.xlane.xlu1 %331 }
 0x13b   : > { %v333_v32 = vrot.slane %v332_v31, 4 }
 0x13d   : > { %v334_v33 = vadd.f32 %v333_v32, %v332_v31 }
 0x13e   : > { %v346_v34 = vpop.xlane.xlu1 %345 }
 0x13f   : > { %v335_v35 = vrot.slane %v334_v33, 2  ;;  %v347_v36 = vrot.slane %v346_v34, 4 }
 0x141   : > { %v348_v37 = vadd.f32 %v347_v36, %v346_v34  ;;  %v336_v38 = vadd.f32 %v335_v35, %v334_v33 }
 0x143   : > { %v349_v39 = vrot.slane %v348_v37, 2  ;;  %v337_v40 = vrot.slane %v336_v38, 1 }
 0x145   : > { %v350_v41 = vadd.f32 %v349_v39, %v348_v37  ;;  %v338_v42 = vadd.f32 %v337_v40, %v336_v38 }
 0x147   : > { %470 = vpush %v338_v42  ;;  %v351_v43 = vrot.slane %v350_v41, 1 }
 0x149   : > { %v352_v44 = vadd.f32 %v351_v43, %v350_v41 }
 0x14b   : > { %472 = vpush %v352_v44 }
 0x178   : > { %s471_s6 = spop %470 }
 0x179   : > { %v340_v45 = vstv %s471_s6 }
 0x17a   : > { %342 = vst.msk [vmem:[%s260_s5] sm:$0x1] %vm341_vm4, %v340_v45 }
 0x17c   : > { %s473_s10 = spop %472 }
 0x17d   : > { %v354_v46 = vstv %s473_s10 }
 0x17e   : > { %355 = vst.msk [vmem:[%s263_s9] sm:$0x1] %vm341_vm4, %v354_v46 }
 0x17f PF: > { %s15_s17 = sadd.s32 1, %s522_s17   ;;  %s603_s15 = smov %s518_s16 }
 0x180   : > { %p12_p5 = scmp.ge.s32.totalorder %s15_s17, 4   ;;  %s604_s16 = smov %s606_s18 }
 0x182   :  { %14 = sbr.rel (!%p12_p5) target bundleno = 2 (0x2), region = 85 }

</bundles_post_ra>
